<compile_context>
chip_gen: v7x
topology: tpu7x:2x2x1
jax: 0.10.0
libtpu: 0.0.40
codegen_flags: <defaults>
</compile_context>

<pallas_src>
import jax
import jax.numpy as jnp
from jax.experimental import pallas as pl
from jax.experimental.pallas import tpu as pltpu

LANE = 128
SUBLANE = 8


def task_head_kernel(x_ref, w1_ref, b1_ref, w2_ref, b2_ref, o_ref):
    # First linear + bias + ReLU (MXU dot, VPU epilogue, f32 accumulation).
    h = jnp.dot(x_ref[...], w1_ref[...], preferred_element_type=jnp.float32)
    h = h + b1_ref[...]                      # b1 is (1, H) -> broadcasts over batch tile
    h = jnp.maximum(h, 0.0)                  # ReLU
    # Dropout(p=0.2) in eval mode is the identity (PyTorch nn.Dropout at inference).
    # Second linear + bias; output dim is padded to a full 128-lane slab (lane-dense store).
    out = jnp.dot(h, w2_ref[...], preferred_element_type=jnp.float32)
    out = out + b2_ref[...]                  # b2 is (1, O_pad)
    o_ref[...] = out.astype(o_ref.dtype)


def _round_up(v, m):
    return ((v + m - 1) // m) * m


def task_head_forward(x, w1, b1, w2, b2, *, tile_b=None):
    """x: [B, D]; w1: [D, H]; b1: [1, H]; w2: [H, O]; b2: [1, O] -> [B, O]"""
    B, D = x.shape
    H = w1.shape[1]
    O = w2.shape[1]

    # --- Lane-dense output: pad the (tiny) output dim up to a multiple of 128 lanes.
    O_pad = max(LANE, _round_up(O, LANE))
    if O_pad != O:
        w2 = jnp.pad(w2, ((0, 0), (0, O_pad - O)))
        b2 = jnp.pad(b2, ((0, 0), (0, O_pad - O)))

    # --- Batch tile: multiple of 8 sublanes, capped so double-buffered x/out tiles
    #     plus resident weights stay well under the v7x 32 MiB scoped-VMEM default.
    if tile_b is None:
        tile_b = min(max(B, SUBLANE), 1024)
    tile_b = _round_up(tile_b, SUBLANE)

    # Pad batch so the grid divides evenly (padded rows are sliced away afterwards).
    B_pad = _round_up(B, tile_b)
    if B_pad != B:
        x = jnp.pad(x, ((0, B_pad - B), (0, 0)))

    grid = (B_pad // tile_b,)
    bytes_f32 = 4
    cost = pl.CostEstimate(
        flops=2 * B_pad * (D * H + H * O_pad),
        transcendentals=0,
        bytes_accessed=(B_pad * D + D * H + H + H * O_pad + O_pad + B_pad * O_pad)
        * bytes_f32,
    )

    out_padded = pl.pallas_call(
        task_head_kernel,
        out_shape=jax.ShapeDtypeStruct((B_pad, O_pad), x.dtype),
        grid=grid,
        in_specs=[
            pl.BlockSpec((tile_b, D), lambda i: (i, 0)),     # x: tiled over batch
            pl.BlockSpec((D, H), lambda i: (0, 0)),          # w1: resident in VMEM
            pl.BlockSpec((1, H), lambda i: (0, 0)),          # b1: resident
            pl.BlockSpec((H, O_pad), lambda i: (0, 0)),      # w2 (lane-padded): resident
            pl.BlockSpec((1, O_pad), lambda i: (0, 0)),      # b2 (lane-padded): resident
        ],
        out_specs=pl.BlockSpec((tile_b, O_pad), lambda i: (i, 0)),
        compiler_params=pltpu.CompilerParams(
            dimension_semantics=("parallel",),               # megacore split on v7x
        ),
        cost_estimate=cost,
    )(x, w1, b1, w2, b2)

    # Strip batch padding and the lane padding on the output dim.
    return out_padded[:B, :O]


def make_params(key, input_dim, hidden_dim, out_dim, dtype=jnp.float32):
    """Deterministic init mimicking nn.Linear's uniform(-1/sqrt(fan_in), 1/sqrt(fan_in)).
    Weights are stored as [in, out] (i.e. PyTorch weight transposed)."""
    k1, k2, k3, k4 = jax.random.split(key, 4)
    lim1 = 1.0 / jnp.sqrt(input_dim)
    lim2 = 1.0 / jnp.sqrt(hidden_dim)
    w1 = jax.random.uniform(k1, (input_dim, hidden_dim), dtype, -lim1, lim1)
    b1 = jax.random.uniform(k2, (1, hidden_dim), dtype, -lim1, lim1)
    w2 = jax.random.uniform(k3, (hidden_dim, out_dim), dtype, -lim2, lim2)
    b2 = jax.random.uniform(k4, (1, out_dim), dtype, -lim2, lim2)
    return w1, b1, w2, b2


if __name__ == "__main__":
    # TaskHead(input_dim=32, task_type='classification', num_classes=2, hidden_dim=None)
    #   -> hidden_dim = input_dim // 2 = 16, output dim = num_classes = 2
    batch, input_dim, num_classes = 8, 32, 2
    hidden_dim = input_dim // 2

    key = jax.random.PRNGKey(0)
    kx, kp = jax.random.split(key)
    x = jax.random.normal(kx, (batch, input_dim), jnp.float32)
    w1, b1, w2, b2 = make_params(kp, input_dim, hidden_dim, num_classes)

    out = task_head_forward(x, w1, b1, w2, b2)
    out = jax.block_until_ready(out)

    # Reference check in plain JAX (same math): x @ w1 + b1 -> relu -> @ w2 + b2.
    ref = jnp.maximum(x @ w1 + b1, 0.0) @ w2 + b2
    assert out.shape == (batch, num_classes)
    assert jnp.allclose(out, ref, atol=1e-5, rtol=1e-5)

    # Also exercise a non-trivially-tiled batch (multiple grid steps, padded tail).
    big_B = 2048 + 40  # forces batch padding and >1 grid iteration
    xb = jax.random.normal(jax.random.PRNGKey(1), (big_B, input_dim), jnp.float32)
    outb = jax.block_until_ready(task_head_forward(xb, w1, b1, w2, b2, tile_b=512))
    refb = jnp.maximum(xb @ w1 + b1, 0.0) @ w2 + b2
    assert outb.shape == (big_B, num_classes)
    assert jnp.allclose(outb, refb, atol=1e-5, rtol=1e-5)

    print("KERNEL_OK")
</pallas_src>

<mosaic_0001>
module attributes {stable_mosaic.version = 11 : i64} {
  func.func @task_head_kernel(%arg0: i32, %arg1: memref<8x32xf32, #tpu.memory_space<vmem>>, %arg2: memref<32x16xf32, #tpu.memory_space<vmem>>, %arg3: memref<1x16xf32, #tpu.memory_space<vmem>>, %arg4: memref<16x128xf32, #tpu.memory_space<vmem>>, %arg5: memref<1x128xf32, #tpu.memory_space<vmem>>, %arg6: memref<8x128xf32, #tpu.memory_space<vmem>>) attributes {dimension_semantics = [#tpu.dimension_semantics<parallel>], iteration_bounds = array<i64: 1>, scalar_prefetch = 0 : i64, scratch_operands = 0 : i64, tpu.core_type = #tpu.core_type<tc>, window_params = [{transform_indices = @transform_0, window_bounds = array<i64: 8, 32>}, {pipeline_mode = #tpu.pipeline_mode<synchronous>, transform_indices = @transform_1, window_bounds = array<i64: 32, 16>}, {pipeline_mode = #tpu.pipeline_mode<synchronous>, transform_indices = @transform_2, window_bounds = array<i64: 1, 16>}, {pipeline_mode = #tpu.pipeline_mode<synchronous>, transform_indices = @transform_3, window_bounds = array<i64: 16, 128>}, {pipeline_mode = #tpu.pipeline_mode<synchronous>, transform_indices = @transform_4, window_bounds = array<i64: 1, 128>}, {transform_indices = @transform_5, window_bounds = array<i64: 8, 128>}]} {
    %c0 = arith.constant 0 : index
    %c0_0 = arith.constant 0 : index
    %0 = vector.load %arg1[%c0, %c0_0] : memref<8x32xf32, #tpu.memory_space<vmem>>, vector<8x32xf32>
    %c0_1 = arith.constant 0 : index
    %c0_2 = arith.constant 0 : index
    %1 = vector.load %arg2[%c0_1, %c0_2] : memref<32x16xf32, #tpu.memory_space<vmem>>, vector<32x16xf32>
    %cst = arith.constant dense<0.000000e+00> : vector<8x16xf32>
    %2 = tpu.matmul %0, %1, %cst {dimension_numbers = #tpu.dot_dimension_numbers<[1], [0], [0], [1], [0, 0, 1, 1], [], []>} : vector<8x32xf32>, vector<32x16xf32>, vector<8x16xf32> -> vector<8x16xf32>
    %c0_3 = arith.constant 0 : index
    %c0_4 = arith.constant 0 : index
    %3 = vector.load %arg3[%c0_3, %c0_4] : memref<1x16xf32, #tpu.memory_space<vmem>>, vector<1x16xf32>
    %4 = vector.broadcast %3 : vector<1x16xf32> to vector<8x16xf32>
    %5 = arith.addf %2, %4 : vector<8x16xf32>
    %cst_5 = arith.constant 0.000000e+00 : f32
    %6 = vector.broadcast %cst_5 : f32 to vector<8x16xf32>
    %7 = arith.maximumf %5, %6 : vector<8x16xf32>
    %c0_6 = arith.constant 0 : index
    %c0_7 = arith.constant 0 : index
    %8 = vector.load %arg4[%c0_6, %c0_7] : memref<16x128xf32, #tpu.memory_space<vmem>>, vector<16x128xf32>
    %cst_8 = arith.constant dense<0.000000e+00> : vector<8x128xf32>
    %9 = tpu.matmul %7, %8, %cst_8 {dimension_numbers = #tpu.dot_dimension_numbers<[1], [0], [0], [1], [0, 0, 1, 1], [], []>} : vector<8x16xf32>, vector<16x128xf32>, vector<8x128xf32> -> vector<8x128xf32>
    %c0_9 = arith.constant 0 : index
    %c0_10 = arith.constant 0 : index
    %10 = vector.load %arg5[%c0_9, %c0_10] : memref<1x128xf32, #tpu.memory_space<vmem>>, vector<1x128xf32>
    %11 = vector.broadcast %10 : vector<1x128xf32> to vector<8x128xf32>
    %12 = arith.addf %9, %11 : vector<8x128xf32>
    %c0_11 = arith.constant 0 : index
    %c0_12 = arith.constant 0 : index
    %13 = vector.load %arg6[%c0_11, %c0_12] : memref<8x128xf32, #tpu.memory_space<vmem>>, vector<8x128xf32>
    tpu.vector_store %arg6[%c0_11, %c0_12], %12 {strides = array<i32>} : memref<8x128xf32, #tpu.memory_space<vmem>>, vector<8x128xf32>,
    return
  }
  func.func @transform_0(%arg0: i32) -> (i32, i32) {
    %c0_i32 = arith.constant 0 : i32
    %c0_i32_0 = arith.constant 0 : i32
    return %arg0, %c0_i32 : i32, i32
  }
  func.func @transform_1(%arg0: i32) -> (i32, i32) {
    %c0_i32 = arith.constant 0 : i32
    %c0_i32_0 = arith.constant 0 : i32
    %c0_i32_1 = arith.constant 0 : i32
    return %c0_i32, %c0_i32_0 : i32, i32
  }
  func.func @transform_2(%arg0: i32) -> (i32, i32) {
    %c0_i32 = arith.constant 0 : i32
    %c0_i32_0 = arith.constant 0 : i32
    %c0_i32_1 = arith.constant 0 : i32
    return %c0_i32, %c0_i32_0 : i32, i32
  }
  func.func @transform_3(%arg0: i32) -> (i32, i32) {
    %c0_i32 = arith.constant 0 : i32
    %c0_i32_0 = arith.constant 0 : i32
    %c0_i32_1 = arith.constant 0 : i32
    return %c0_i32, %c0_i32_0 : i32, i32
  }
  func.func @transform_4(%arg0: i32) -> (i32, i32) {
    %c0_i32 = arith.constant 0 : i32
    %c0_i32_0 = arith.constant 0 : i32
    %c0_i32_1 = arith.constant 0 : i32
    return %c0_i32, %c0_i32_0 : i32, i32
  }
  func.func @transform_5(%arg0: i32) -> (i32, i32) {
    %c0_i32 = arith.constant 0 : i32
    %c0_i32_0 = arith.constant 0 : i32
    return %arg0, %c0_i32 : i32, i32
  }
}

</mosaic_0001>

<bundles_post_ra>
// kernel: tpu_custom_call.1
= control target key start
LH: loop header
LB: loop body
LE: loop exit
PB: predicated region body
PF: predicated region fallthrough
CT: control target
= control target key end

     0   :  { %v273_v3 = vmov 0.0|0.0   ;;  %vm274_vm0 = vmmov 0   ;;  %v275_v6 = vmov 0.0   ;;  %s346_s0 = inlined_call_operand.vmem [shape: f32[8,32], index: 0, kind: input, shape index: {}]   ;;  %s347_s1 = inlined_call_operand.vmem [shape: f32[32,16], index: 1, kind: input, shape index: {}]   ;;  %s348_s2 = inlined_call_operand.vmem [shape: f32[1,16], index: 2, kind: input, shape index: {}]   ;;  %s349_s3 = inlined_call_operand.vmem [shape: f32[16,128], index: 3, kind: input, shape index: {}]   ;;  %s350_s4 = inlined_call_operand.vmem [shape: f32[1,128], index: 4, kind: input, shape index: {}]   ;;  %s351_s5 = inlined_call_operand.hbm [shape: f32[8,128], index: 5, kind: output, shape index: {}]  }
   0x1   :  { %v22_v0 = vld [vmem:[%s347_s1] sm:$0xff]  ;;  %v23_v1 = vld [vmem:[%s347_s1 + $0x8] sm:$0xff]  ;;  %v24_v2 = vld [vmem:[%s347_s1 + $0x10] sm:$0xff]  ;;  %236 = vmatprep.subr.bf16.mxu0 %v273_v3  ;;  %226 = vmatprep.mubr.msk.f32.mxu0 %vm274_vm0, %v275_v6 }
   0x2   :  { %v237_v4 = vpack.c.bf16 %v23_v1, %v22_v0  ;;  %v25_v5 = vld [vmem:[%s347_s1 + $0x18] sm:$0xff]  ;;  %242 = vmatprep.subr.bf16.mxu1 %v273_v3  ;;  %233 = vmatprep.mubr.msk.f32.mxu1 %vm274_vm0, %v275_v6 }
   0x3   :  { %10 = vsyncpa [#allocation3], 0  ;;  %v240_v7 = vpack.c.bf16 %v25_v5, %v24_v2  ;;  %v21_v8 = vld [vmem:[%s346_s0] sm:$0xff]  ;;  %vm33_vm1 = vcmask 261120   ;;  %v109_v10 = vld [vmem:[%s349_s3 + $0x8] sm:$0xff]  ;;  %vm117_vm2 = vcmask 130048  }
   0x4   :  { %238 = vmatpush3.bf16.msra.mxu0 %v237_v4  ;;  %v108_v9 = vld [vmem:[%s349_s3] sm:$0xff]  ;;  %s276_s9 = smov [#allocation2]  }
   0x5   :  { %239 = vmatprep.subr.bf16.mxu0 %v273_v3  ;;  %v243_v11 = vpack.c.bf16 %v109_v10, %v108_v9  ;;  %v206_v12 = vld [vmem:[%s348_s2] ss:$0 sm:$0xff]  ;;  %s198_s10 = sshll.u32 %s276_s9, 4  ;;  %s199_s10 = int_to_ptr.vmem [resolvable:$true] %s198_s10 }
   0x6   :  { %v208_v17 = vld [vmem:[%s350_s4] ss:$0 sm:$0xff]  ;;  %s249_s3 = scalar_lea.vmem %s199_s10, 128  ;;  %p254_p1 = scmp.lt.s32.totalorder %s199_s10, %s199_s10 }
   0x7   :  { %244 = vmatpush3.bf16.msra.mxu1 %v243_v11  ;;  %p250_p0 = scmp.ne.s32.totalorder %s199_s10, %s249_s3  ;;  %p255_p2 = scmp.lt.s32.totalorder %s249_s3, %s249_s3 }
   0x8   :  { %241 = vmatpush3.bf16.msra.mxu0 %v240_v7 }
   0x9   :  { %p256_p3 = por %p255_p2, %p254_p1 }
   0xb   :  { %227 = vmatmul.mubr.msk.f32.vlgmr.msra.gmra.mrb[0].mxu0 %vm33_vm1, %v21_v8  ;;  %p257_p4 = pnand %p256_p3, %p250_p0 }
  0xde   :  { %v103_v13 = vpop.f32.mrb[0].mxu0 }
  0xdf   :  { %v104_v14 = vadd.f32 %v206_v12, %v103_v13  ;;  %v228_v15 = vpop.f32.mrb[1].mxu0 }
  0xe1   :  { %v107_v16 = vmax.f32 %v104_v14, 0.0 }
  0xe3   :  { %234 = vmatmul.mubr.msk.f32.vlgmr.msra.gmra.mrb[0].mxu1 %vm117_vm2, %v107_v16 }
 0x1b6   :  { %v187_v18 = vpop.f32.mrb[0].mxu1 }
 0x1b7   :  { %v188_v19 = vadd.f32 %v208_v17, %v187_v18  ;;  %v235_v20 = vpop.f32.mrb[1].mxu1 }
 0x1b9   :  { %191 = vst [vmem:[#allocation2] sm:$0xff] %v188_v19 }
 0x1ba   :  { %260 = shalt.err (!%p257_p4)
}
 0x1bb   :  { %s261_s12 = scalar_lea.hbm %s351_s5, 128 }
 0x1bc   :  { %p262_p5 = scmp.ne.s32.totalorder %s351_s5, %s261_s12  ;;  %p265_p6 = scmp.lt.u32.totalorder %s261_s12, %s351_s5 }
 0x1be   :  { %p267_p7 = pnand %p265_p6, %p262_p5 }
 0x1c0   :  { %270 = shalt.err (!%p267_p7)
}
 0x1c1   :  { %201 = dma.vmem_to_hbm [thread:$0]  %s199_s10, 128, %s351_s5, [#allocation3]  }
 0x1c2   :  { %271 = dma.done.wait [#allocation3], 128  }
 0x1c3   :  { %272 = vsyncadd [#allocation3], 4294967168 }
 0x1c4   :  { %205 = vsyncpa [#allocation3], 1 }

</bundles_post_ra>
